<compile_context>
chip_gen: v6e
topology: v6e:2x2x1
jax: 0.10.0
libtpu: 0.0.40
codegen_flags: <defaults>
</compile_context>

<pallas_src>
import functools

import jax
import jax.numpy as jnp
from jax.experimental import pallas as pl
from jax.experimental.pallas import tpu as pltpu

EPS = 1e-5  # PyTorch BatchNorm1d default


def _conv3_matmuls(h, w_ref):
    """Conv1d(kernel=3, padding=1, bias=False) on a channels-last (L, C) tile.

    Three accumulating MXU matmuls against the flattened weight ref
    (3*C, O) with row index f = k*C + c (k=0 taps x[l-1]).  The two shifted
    views are built with a single zero row + static slice (unambiguous
    semantics); pltpu.roll + an iota mask is an equivalent alternative that
    moves the shift onto the otherwise idle XLU slot.
    """
    ll, cc = h.shape
    zero_row = jnp.zeros((1, cc), dtype=h.dtype)
    h_prev = jnp.concatenate([zero_row, h[:-1, :]], axis=0)   # x[l-1], 0 at l=0
    h_next = jnp.concatenate([h[1:, :], zero_row], axis=0)    # x[l+1], 0 at l=L-1
    y = jnp.dot(h, w_ref[cc:2 * cc, :], preferred_element_type=jnp.float32)
    y = y + jnp.dot(h_prev, w_ref[0:cc, :], preferred_element_type=jnp.float32)
    y = y + jnp.dot(h_next, w_ref[2 * cc:3 * cc, :], preferred_element_type=jnp.float32)
    return y


def _bn_scale_shift(s_ref, ss_ref, g_ref, b_ref, inv_count):
    """Fold training-mode BatchNorm into one per-channel (scale, shift) FMA."""
    mean = s_ref[...] * inv_count                                    # (1, C)
    var = jnp.maximum(ss_ref[...] * inv_count - mean * mean, 0.0)    # biased var
    scale = g_ref[...] * jax.lax.rsqrt(var + EPS)
    shift = b_ref[...] - mean * scale
    return scale, shift


def _pool_conv1_kernel(x_ref, w_ref, y_ref, s_ref, ss_ref):
    # x_ref: (1, L, Cin); w_ref: (3*Cin, Cmid)
    # y_ref: (1, L2, Cmid) pre-BN conv1 output
    # s_ref / ss_ref: (1, 1, Cmid) per-tile partial BN sums
    l2 = y_ref.shape[1]
    # MaxPool1d(2): stride-2 sublane loads + one elementwise max (no relayout).
    x_even = x_ref[:, pl.ds(0, l2, stride=2), :]
    x_odd = x_ref[:, pl.ds(1, l2, stride=2), :]
    xp = jnp.maximum(x_even, x_odd)[0]                      # (L2, Cin)
    y = _conv3_matmuls(xp, w_ref)                           # (L2, Cmid) f32
    y_ref[0] = y
    s_ref[0] = jnp.sum(y, axis=0, keepdims=True)
    ss_ref[0] = jnp.sum(y * y, axis=0, keepdims=True)


def _bn_relu_conv2_kernel(y1_ref, s_ref, ss_ref, g_ref, b_ref, w_ref,
                          y2_ref, s2_ref, ss2_ref, *, inv_count):
    scale, shift = _bn_scale_shift(s_ref, ss_ref, g_ref, b_ref, inv_count)
    h = jnp.maximum(y1_ref[0] * scale + shift, 0.0)         # fused BN+ReLU FMA
    y = _conv3_matmuls(h, w_ref)                            # (L2, Cout)
    y2_ref[0] = y
    s2_ref[0] = jnp.sum(y, axis=0, keepdims=True)
    ss2_ref[0] = jnp.sum(y * y, axis=0, keepdims=True)


def _bn_relu_kernel(y2_ref, s_ref, ss_ref, g_ref, b_ref, o_ref, *, inv_count):
    scale, shift = _bn_scale_shift(s_ref, ss_ref, g_ref, b_ref, inv_count)
    o_ref[0] = jnp.maximum(y2_ref[0] * scale + shift, 0.0)  # fused BN+ReLU FMA


@jax.jit
def down_forward(x_ncl, w1, g1, b1, w2, g2, b2):
    """x_ncl: (N, C_in, L) PyTorch layout.  Returns (N, C_out, L // 2)."""
    N, Cin, L = x_ncl.shape
    Cmid = w1.shape[0]
    Cout = w2.shape[0]
    L2 = L // 2
    inv_count = 1.0 / float(N * L2)            # BN batch-stat element count

    # --- glue: layout / weight flattening only ---
    x_nlc = jnp.transpose(x_ncl, (0, 2, 1)).astype(jnp.float32)          # (N, L, Cin)
    # PyTorch conv weight (O, C, K) -> (K*C, O); feature index f = k*C + c.
    w1f = jnp.transpose(w1, (2, 1, 0)).reshape(3 * Cin, Cmid).astype(jnp.float32)
    w2f = jnp.transpose(w2, (2, 1, 0)).reshape(3 * Cmid, Cout).astype(jnp.float32)
    g1r = g1.reshape(1, Cmid).astype(jnp.float32)
    b1r = b1.reshape(1, Cmid).astype(jnp.float32)
    g2r = g2.reshape(1, Cout).astype(jnp.float32)
    b2r = b2.reshape(1, Cout).astype(jnp.float32)

    cparams = pltpu.CompilerParams(
        dimension_semantics=("parallel",),          # batch tiles are independent
        vmem_limit_bytes=64 * 1024 * 1024,
    )

    # ---- Stage 1: MaxPool1d(2) + Conv1 (+ partial BN1 stats) ----
    y1, s1, ss1 = pl.pallas_call(
        _pool_conv1_kernel,
        grid=(N,),
        in_specs=[
            pl.BlockSpec((1, L, Cin), lambda i: (i, 0, 0)),
            pl.BlockSpec((3 * Cin, Cmid), lambda i: (0, 0)),
        ],
        out_specs=(
            pl.BlockSpec((1, L2, Cmid), lambda i: (i, 0, 0)),
            pl.BlockSpec((1, 1, Cmid), lambda i: (i, 0, 0)),
            pl.BlockSpec((1, 1, Cmid), lambda i: (i, 0, 0)),
        ),
        out_shape=(
            jax.ShapeDtypeStruct((N, L2, Cmid), jnp.float32),
            jax.ShapeDtypeStruct((N, 1, Cmid), jnp.float32),
            jax.ShapeDtypeStruct((N, 1, Cmid), jnp.float32),
        ),
        compiler_params=cparams,
    )(x_nlc, w1f)
    s1t = jnp.sum(s1, axis=0)        # (1, Cmid) tiny cross-tile stat reduction
    ss1t = jnp.sum(ss1, axis=0)

    # ---- Stage 2: BN1+ReLU (fused FMA) + Conv2 (+ partial BN2 stats) ----
    y2, s2, ss2 = pl.pallas_call(
        functools.partial(_bn_relu_conv2_kernel, inv_count=inv_count),
        grid=(N,),
        in_specs=[
            pl.BlockSpec((1, L2, Cmid), lambda i: (i, 0, 0)),
            pl.BlockSpec((1, Cmid), lambda i: (0, 0)),
            pl.BlockSpec((1, Cmid), lambda i: (0, 0)),
            pl.BlockSpec((1, Cmid), lambda i: (0, 0)),
            pl.BlockSpec((1, Cmid), lambda i: (0, 0)),
            pl.BlockSpec((3 * Cmid, Cout), lambda i: (0, 0)),
        ],
        out_specs=(
            pl.BlockSpec((1, L2, Cout), lambda i: (i, 0, 0)),
            pl.BlockSpec((1, 1, Cout), lambda i: (i, 0, 0)),
            pl.BlockSpec((1, 1, Cout), lambda i: (i, 0, 0)),
        ),
        out_shape=(
            jax.ShapeDtypeStruct((N, L2, Cout), jnp.float32),
            jax.ShapeDtypeStruct((N, 1, Cout), jnp.float32),
            jax.ShapeDtypeStruct((N, 1, Cout), jnp.float32),
        ),
        compiler_params=cparams,
    )(y1, s1t, ss1t, g1r, b1r, w2f)
    s2t = jnp.sum(s2, axis=0)
    ss2t = jnp.sum(ss2, axis=0)

    # ---- Stage 3: BN2+ReLU (fused FMA) ----
    out_nlc = pl.pallas_call(
        functools.partial(_bn_relu_kernel, inv_count=inv_count),
        grid=(N,),
        in_specs=[
            pl.BlockSpec((1, L2, Cout), lambda i: (i, 0, 0)),
            pl.BlockSpec((1, Cout), lambda i: (0, 0)),
            pl.BlockSpec((1, Cout), lambda i: (0, 0)),
            pl.BlockSpec((1, Cout), lambda i: (0, 0)),
            pl.BlockSpec((1, Cout), lambda i: (0, 0)),
        ],
        out_specs=pl.BlockSpec((1, L2, Cout), lambda i: (i, 0, 0)),
        out_shape=jax.ShapeDtypeStruct((N, L2, Cout), jnp.float32),
        compiler_params=cparams,
    )(y2, s2t, ss2t, g2r, b2r)

    return jnp.transpose(out_nlc, (0, 2, 1))                # back to NCL


def down_reference(x_ncl, w1, g1, b1, w2, g2, b2):
    """Pure-JAX/XLA reference of the PyTorch module (train-mode BatchNorm)."""
    N, Cin, L = x_ncl.shape
    L2 = L // 2
    xp = jnp.max(x_ncl[:, :, :2 * L2].reshape(N, Cin, L2, 2), axis=-1)

    def conv_bn_relu(h, w, gamma, beta):
        y = jax.lax.conv_general_dilated(
            h, w, window_strides=(1,), padding=((1, 1),),
            dimension_numbers=("NCH", "OIH", "NCH"),
            precision=jax.lax.Precision.HIGHEST)
        mean = jnp.mean(y, axis=(0, 2), keepdims=True)
        var = jnp.mean((y - mean) ** 2, axis=(0, 2), keepdims=True)
        yhat = (y - mean) * jax.lax.rsqrt(var + EPS)
        out = gamma.reshape(1, -1, 1) * yhat + beta.reshape(1, -1, 1)
        return jnp.maximum(out, 0.0)

    return conv_bn_relu(conv_bn_relu(xp, w1, g1, b1), w2, g2, b2)


def init_down_params(key, in_channels, out_channels):
    """Deterministic params matching Down(in_channels, out_channels)."""
    mid = out_channels
    k1, k2 = jax.random.split(key)
    bound1 = (1.0 / (in_channels * 3)) ** 0.5
    bound2 = (1.0 / (mid * 3)) ** 0.5
    w1 = jax.random.uniform(k1, (mid, in_channels, 3), jnp.float32, -bound1, bound1)
    w2 = jax.random.uniform(k2, (out_channels, mid, 3), jnp.float32, -bound2, bound2)
    g1 = jnp.ones((mid,), jnp.float32)
    b1 = jnp.zeros((mid,), jnp.float32)
    g2 = jnp.ones((out_channels,), jnp.float32)
    b2 = jnp.zeros((out_channels,), jnp.float32)
    return w1, g1, b1, w2, g2, b2


if __name__ == "__main__":
    key = jax.random.PRNGKey(0)
    kx, kp = jax.random.split(key)

    N, C_in, C_out, L = 2, 4, 8, 16
    x = jax.random.normal(kx, (N, C_in, L), jnp.float32)    # PyTorch NCL layout
    params = init_down_params(kp, C_in, C_out)

    out = jax.block_until_ready(down_forward(x, *params))

    assert out.shape == (N, C_out, L // 2), out.shape
    assert bool(jnp.all(jnp.isfinite(out)))
    assert bool(jnp.all(out >= 0.0))                        # final ReLU

    # Pure-JAX reference check.  Tolerance is loose only to absorb MXU vs XLA
    # conv precision-mode differences; a structural bug would be O(1) off.
    ref = jax.block_until_ready(down_reference(x, *params))
    assert bool(jnp.max(jnp.abs(out - ref)) < 5e-2)

    print("KERNEL_OK")
</pallas_src>

<mosaic_0001>
module attributes {stable_mosaic.version = 11 : i64} {
  func.func @_pool_conv1_kernel(%arg0: i32, %arg1: memref<1x16x4xf32, #tpu.memory_space<vmem>>, %arg2: memref<12x8xf32, #tpu.memory_space<vmem>>, %arg3: memref<1x8x8xf32, #tpu.memory_space<vmem>>, %arg4: memref<1x1x8xf32, #tpu.memory_space<vmem>>, %arg5: memref<1x1x8xf32, #tpu.memory_space<vmem>>) attributes {dimension_semantics = [#tpu.dimension_semantics<parallel>], iteration_bounds = array<i64: 2>, scalar_prefetch = 0 : i64, scratch_operands = 0 : i64, tpu.core_type = #tpu.core_type<tc>, window_params = [{transform_indices = @transform_0, window_bounds = array<i64: 1, 16, 4>}, {pipeline_mode = #tpu.pipeline_mode<synchronous>, transform_indices = @transform_1, window_bounds = array<i64: 12, 8>}, {transform_indices = @transform_2, window_bounds = array<i64: 1, 8, 8>}, {transform_indices = @transform_3, window_bounds = array<i64: 1, 1, 8>}, {transform_indices = @transform_4, window_bounds = array<i64: 1, 1, 8>}]} {
    %c0 = arith.constant 0 : index
    %c0_0 = arith.constant 0 : index
    %c0_1 = arith.constant 0 : index
    %0 = tpu.strided_load %arg1[%c0, %c0_0, %c0_1] {strides = array<i32: 1, 2, 1>} : memref<1x16x4xf32, #tpu.memory_space<vmem>>, vector<1x8x4xf32>
    %c0_2 = arith.constant 0 : index
    %c1 = arith.constant 1 : index
    %c0_3 = arith.constant 0 : index
    %1 = tpu.strided_load %arg1[%c0_2, %c1, %c0_3] {strides = array<i32: 1, 2, 1>} : memref<1x16x4xf32, #tpu.memory_space<vmem>>, vector<1x8x4xf32>
    %2 = arith.maximumf %0, %1 : vector<1x8x4xf32>
    %3 = vector.shape_cast %2 : vector<1x8x4xf32> to vector<8x4xf32>
    %cst = arith.constant 0.000000e+00 : f32
    %4 = vector.broadcast %cst : f32 to vector<1x4xf32>
    %5 = vector.extract_strided_slice %3 {offsets = [0, 0], sizes = [7, 4], strides = [1, 1]} : vector<8x4xf32> to vector<7x4xf32>
    %6 = tpu.concatenate %4, %5 in 0 : vector<1x4xf32>, vector<7x4xf32> -> vector<8x4xf32>
    %7 = vector.extract_strided_slice %3 {offsets = [1, 0], sizes = [7, 4], strides = [1, 1]} : vector<8x4xf32> to vector<7x4xf32>
    %8 = tpu.concatenate %7, %4 in 0 : vector<7x4xf32>, vector<1x4xf32> -> vector<8x4xf32>
    %c4 = arith.constant 4 : index
    %c0_4 = arith.constant 0 : index
    %9 = vector.load %arg2[%c4, %c0_4] : memref<12x8xf32, #tpu.memory_space<vmem>>, vector<4x8xf32>
    %cst_5 = arith.constant dense<0.000000e+00> : vector<8x8xf32>
    %10 = tpu.matmul %3, %9, %cst_5 {dimension_numbers = #tpu.dot_dimension_numbers<[1], [0], [0], [1], [0, 0, 1, 1], [], []>} : vector<8x4xf32>, vector<4x8xf32>, vector<8x8xf32> -> vector<8x8xf32>
    %c0_6 = arith.constant 0 : index
    %c0_7 = arith.constant 0 : index
    %11 = vector.load %arg2[%c0_6, %c0_7] : memref<12x8xf32, #tpu.memory_space<vmem>>, vector<4x8xf32>
    %cst_8 = arith.constant dense<0.000000e+00> : vector<8x8xf32>
    %12 = tpu.matmul %6, %11, %cst_8 {dimension_numbers = #tpu.dot_dimension_numbers<[1], [0], [0], [1], [0, 0, 1, 1], [], []>} : vector<8x4xf32>, vector<4x8xf32>, vector<8x8xf32> -> vector<8x8xf32>
    %13 = arith.addf %10, %12 : vector<8x8xf32>
    %c8 = arith.constant 8 : index
    %c0_9 = arith.constant 0 : index
    %14 = vector.load %arg2[%c8, %c0_9] : memref<12x8xf32, #tpu.memory_space<vmem>>, vector<4x8xf32>
    %cst_10 = arith.constant dense<0.000000e+00> : vector<8x8xf32>
    %15 = tpu.matmul %8, %14, %cst_10 {dimension_numbers = #tpu.dot_dimension_numbers<[1], [0], [0], [1], [0, 0, 1, 1], [], []>} : vector<8x4xf32>, vector<4x8xf32>, vector<8x8xf32> -> vector<8x8xf32>
    %16 = arith.addf %13, %15 : vector<8x8xf32>
    %c0_11 = arith.constant 0 : index
    %c0_12 = arith.constant 0 : index
    %c0_13 = arith.constant 0 : index
    %17 = vector.load %arg3[%c0_11, %c0_12, %c0_13] : memref<1x8x8xf32, #tpu.memory_space<vmem>>, vector<1x8x8xf32>
    %18 = vector.shape_cast %17 : vector<1x8x8xf32> to vector<8x8xf32>
    %19 = vector.shape_cast %16 : vector<8x8xf32> to vector<1x8x8xf32>
    tpu.vector_store %arg3[%c0_11, %c0_12, %c0_13], %19 {strides = array<i32>} : memref<1x8x8xf32, #tpu.memory_space<vmem>>, vector<1x8x8xf32>,
    %cst_14 = arith.constant dense<0.000000e+00> : vector<8xf32>
    %20 = vector.multi_reduction <add>, %16, %cst_14 [0] : vector<8x8xf32> to vector<8xf32>
    %21 = vector.shape_cast %20 : vector<8xf32> to vector<1x8xf32>
    %c0_15 = arith.constant 0 : index
    %c0_16 = arith.constant 0 : index
    %c0_17 = arith.constant 0 : index
    %22 = vector.load %arg4[%c0_15, %c0_16, %c0_17] : memref<1x1x8xf32, #tpu.memory_space<vmem>>, vector<1x1x8xf32>
    %23 = vector.shape_cast %22 : vector<1x1x8xf32> to vector<1x8xf32>
    %24 = vector.shape_cast %21 : vector<1x8xf32> to vector<1x1x8xf32>
    tpu.vector_store %arg4[%c0_15, %c0_16, %c0_17], %24 {strides = array<i32>} : memref<1x1x8xf32, #tpu.memory_space<vmem>>, vector<1x1x8xf32>,
    %25 = arith.mulf %16, %16 : vector<8x8xf32>
    %cst_18 = arith.constant dense<0.000000e+00> : vector<8xf32>
    %26 = vector.multi_reduction <add>, %25, %cst_18 [0] : vector<8x8xf32> to vector<8xf32>
    %27 = vector.shape_cast %26 : vector<8xf32> to vector<1x8xf32>
    %c0_19 = arith.constant 0 : index
    %c0_20 = arith.constant 0 : index
    %c0_21 = arith.constant 0 : index
    %28 = vector.load %arg5[%c0_19, %c0_20, %c0_21] : memref<1x1x8xf32, #tpu.memory_space<vmem>>, vector<1x1x8xf32>
    %29 = vector.shape_cast %28 : vector<1x1x8xf32> to vector<1x8xf32>
    %30 = vector.shape_cast %27 : vector<1x8xf32> to vector<1x1x8xf32>
    tpu.vector_store %arg5[%c0_19, %c0_20, %c0_21], %30 {strides = array<i32>} : memref<1x1x8xf32, #tpu.memory_space<vmem>>, vector<1x1x8xf32>,
    return
  }
  func.func @transform_0(%arg0: i32) -> (i32, i32, i32) {
    %c0_i32 = arith.constant 0 : i32
    %c0_i32_0 = arith.constant 0 : i32
    %c0_i32_1 = arith.constant 0 : i32
    return %arg0, %c0_i32, %c0_i32_0 : i32, i32, i32
  }
  func.func @transform_1(%arg0: i32) -> (i32, i32) {
    %c0_i32 = arith.constant 0 : i32
    %c0_i32_0 = arith.constant 0 : i32
    %c0_i32_1 = arith.constant 0 : i32
    return %c0_i32, %c0_i32_0 : i32, i32
  }
  func.func @transform_2(%arg0: i32) -> (i32, i32, i32) {
    %c0_i32 = arith.constant 0 : i32
    %c0_i32_0 = arith.constant 0 : i32
    %c0_i32_1 = arith.constant 0 : i32
    return %arg0, %c0_i32, %c0_i32_0 : i32, i32, i32
  }
  func.func @transform_3(%arg0: i32) -> (i32, i32, i32) {
    %c0_i32 = arith.constant 0 : i32
    %c0_i32_0 = arith.constant 0 : i32
    %c0_i32_1 = arith.constant 0 : i32
    return %arg0, %c0_i32, %c0_i32_0 : i32, i32, i32
  }
  func.func @transform_4(%arg0: i32) -> (i32, i32, i32) {
    %c0_i32 = arith.constant 0 : i32
    %c0_i32_0 = arith.constant 0 : i32
    %c0_i32_1 = arith.constant 0 : i32
    return %arg0, %c0_i32, %c0_i32_0 : i32, i32, i32
  }
}

module attributes {stable_mosaic.version = 11 : i64} {
  func.func @_bn_relu_conv2_kernel(%arg0: i32, %arg1: memref<1x8x8xf32, #tpu.memory_space<vmem>>, %arg2: memref<1x8xf32, #tpu.memory_space<vmem>>, %arg3: memref<1x8xf32, #tpu.memory_space<vmem>>, %arg4: memref<1x8xf32, #tpu.memory_space<vmem>>, %arg5: memref<1x8xf32, #tpu.memory_space<vmem>>, %arg6: memref<24x8xf32, #tpu.memory_space<vmem>>, %arg7: memref<1x8x8xf32, #tpu.memory_space<vmem>>, %arg8: memref<1x1x8xf32, #tpu.memory_space<vmem>>, %arg9: memref<1x1x8xf32, #tpu.memory_space<vmem>>) attributes {dimension_semantics = [#tpu.dimension_semantics<parallel>], iteration_bounds = array<i64: 2>, scalar_prefetch = 0 : i64, scratch_operands = 0 : i64, tpu.core_type = #tpu.core_type<tc>, window_params = [{transform_indices = @transform_0, window_bounds = array<i64: 1, 8, 8>}, {pipeline_mode = #tpu.pipeline_mode<synchronous>, transform_indices = @transform_1, window_bounds = array<i64: 1, 8>}, {pipeline_mode = #tpu.pipeline_mode<synchronous>, transform_indices = @transform_2, window_bounds = array<i64: 1, 8>}, {pipeline_mode = #tpu.pipeline_mode<synchronous>, transform_indices = @transform_3, window_bounds = array<i64: 1, 8>}, {pipeline_mode = #tpu.pipeline_mode<synchronous>, transform_indices = @transform_4, window_bounds = array<i64: 1, 8>}, {pipeline_mode = #tpu.pipeline_mode<synchronous>, transform_indices = @transform_5, window_bounds = array<i64: 24, 8>}, {transform_indices = @transform_6, window_bounds = array<i64: 1, 8, 8>}, {transform_indices = @transform_7, window_bounds = array<i64: 1, 1, 8>}, {transform_indices = @transform_8, window_bounds = array<i64: 1, 1, 8>}]} {
    %c0 = arith.constant 0 : index
    %c0_0 = arith.constant 0 : index
    %0 = vector.load %arg2[%c0, %c0_0] : memref<1x8xf32, #tpu.memory_space<vmem>>, vector<1x8xf32>
    %cst = arith.constant 6.250000e-02 : f32
    %1 = vector.broadcast %cst : f32 to vector<1x8xf32>
    %2 = arith.mulf %0, %1 : vector<1x8xf32>
    %c0_1 = arith.constant 0 : index
    %c0_2 = arith.constant 0 : index
    %3 = vector.load %arg3[%c0_1, %c0_2] : memref<1x8xf32, #tpu.memory_space<vmem>>, vector<1x8xf32>
    %cst_3 = arith.constant 6.250000e-02 : f32
    %4 = vector.broadcast %cst_3 : f32 to vector<1x8xf32>
    %5 = arith.mulf %3, %4 : vector<1x8xf32>
    %6 = arith.mulf %2, %2 : vector<1x8xf32>
    %7 = arith.subf %5, %6 : vector<1x8xf32>
    %cst_4 = arith.constant 0.000000e+00 : f32
    %8 = vector.broadcast %cst_4 : f32 to vector<1x8xf32>
    %9 = arith.maximumf %7, %8 : vector<1x8xf32>
    %c0_5 = arith.constant 0 : index
    %c0_6 = arith.constant 0 : index
    %10 = vector.load %arg4[%c0_5, %c0_6] : memref<1x8xf32, #tpu.memory_space<vmem>>, vector<1x8xf32>
    %cst_7 = arith.constant 9.99999974E-6 : f32
    %11 = vector.broadcast %cst_7 : f32 to vector<1x8xf32>
    %12 = arith.addf %9, %11 : vector<1x8xf32>
    %13 = math.rsqrt %12 : vector<1x8xf32>
    %14 = arith.mulf %10, %13 : vector<1x8xf32>
    %c0_8 = arith.constant 0 : index
    %c0_9 = arith.constant 0 : index
    %15 = vector.load %arg5[%c0_8, %c0_9] : memref<1x8xf32, #tpu.memory_space<vmem>>, vector<1x8xf32>
    %16 = arith.mulf %2, %14 : vector<1x8xf32>
    %17 = arith.subf %15, %16 : vector<1x8xf32>
    %c0_10 = arith.constant 0 : index
    %c0_11 = arith.constant 0 : index
    %c0_12 = arith.constant 0 : index
    %18 = vector.load %arg1[%c0_10, %c0_11, %c0_12] : memref<1x8x8xf32, #tpu.memory_space<vmem>>, vector<1x8x8xf32>
    %19 = vector.shape_cast %18 : vector<1x8x8xf32> to vector<8x8xf32>
    %20 = vector.broadcast %14 : vector<1x8xf32> to vector<8x8xf32>
    %21 = arith.mulf %19, %20 : vector<8x8xf32>
    %22 = vector.broadcast %17 : vector<1x8xf32> to vector<8x8xf32>
    %23 = arith.addf %21, %22 : vector<8x8xf32>
    %cst_13 = arith.constant 0.000000e+00 : f32
    %24 = vector.broadcast %cst_13 : f32 to vector<8x8xf32>
    %25 = arith.maximumf %23, %24 : vector<8x8xf32>
    %cst_14 = arith.constant 0.000000e+00 : f32
    %26 = vector.broadcast %cst_14 : f32 to vector<1x8xf32>
    %27 = vector.extract_strided_slice %25 {offsets = [0, 0], sizes = [7, 8], strides = [1, 1]} : vector<8x8xf32> to vector<7x8xf32>
    %28 = tpu.concatenate %26, %27 in 0 : vector<1x8xf32>, vector<7x8xf32> -> vector<8x8xf32>
    %29 = vector.extract_strided_slice %25 {offsets = [1, 0], sizes = [7, 8], strides = [1, 1]} : vector<8x8xf32> to vector<7x8xf32>
    %30 = tpu.concatenate %29, %26 in 0 : vector<7x8xf32>, vector<1x8xf32> -> vector<8x8xf32>
    %c8 = arith.constant 8 : index
    %c0_15 = arith.constant 0 : index
    %31 = vector.load %arg6[%c8, %c0_15] : memref<24x8xf32, #tpu.memory_space<vmem>>, vector<8x8xf32>
    %cst_16 = arith.constant dense<0.000000e+00> : vector<8x8xf32>
    %32 = tpu.matmul %25, %31, %cst_16 {dimension_numbers = #tpu.dot_dimension_numbers<[1], [0], [0], [1], [0, 0, 1, 1], [], []>} : vector<8x8xf32>, vector<8x8xf32>, vector<8x8xf32> -> vector<8x8xf32>
    %c0_17 = arith.constant 0 : index
    %c0_18 = arith.constant 0 : index
    %33 = vector.load %arg6[%c0_17, %c0_18] : memref<24x8xf32, #tpu.memory_space<vmem>>, vector<8x8xf32>
    %cst_19 = arith.constant dense<0.000000e+00> : vector<8x8xf32>
    %34 = tpu.matmul %28, %33, %cst_19 {dimension_numbers = #tpu.dot_dimension_numbers<[1], [0], [0], [1], [0, 0, 1, 1], [], []>} : vector<8x8xf32>, vector<8x8xf32>, vector<8x8xf32> -> vector<8x8xf32>
    %35 = arith.addf %32, %34 : vector<8x8xf32>
    %c16 = arith.constant 16 : index
    %c0_20 = arith.constant 0 : index
    %36 = vector.load %arg6[%c16, %c0_20] : memref<24x8xf32, #tpu.memory_space<vmem>>, vector<8x8xf32>
    %cst_21 = arith.constant dense<0.000000e+00> : vector<8x8xf32>
    %37 = tpu.matmul %30, %36, %cst_21 {dimension_numbers = #tpu.dot_dimension_numbers<[1], [0], [0], [1], [0, 0, 1, 1], [], []>} : vector<8x8xf32>, vector<8x8xf32>, vector<8x8xf32> -> vector<8x8xf32>
    %38 = arith.addf %35, %37 : vector<8x8xf32>
    %c0_22 = arith.constant 0 : index
    %c0_23 = arith.constant 0 : index
    %c0_24 = arith.constant 0 : index
    %39 = vector.load %arg7[%c0_22, %c0_23, %c0_24] : memref<1x8x8xf32, #tpu.memory_space<vmem>>, vector<1x8x8xf32>
    %40 = vector.shape_cast %39 : vector<1x8x8xf32> to vector<8x8xf32>
    %41 = vector.shape_cast %38 : vector<8x8xf32> to vector<1x8x8xf32>
    tpu.vector_store %arg7[%c0_22, %c0_23, %c0_24], %41 {strides = array<i32>} : memref<1x8x8xf32, #tpu.memory_space<vmem>>, vector<1x8x8xf32>,
    %cst_25 = arith.constant dense<0.000000e+00> : vector<8xf32>
    %42 = vector.multi_reduction <add>, %38, %cst_25 [0] : vector<8x8xf32> to vector<8xf32>
    %43 = vector.shape_cast %42 : vector<8xf32> to vector<1x8xf32>
    %c0_26 = arith.constant 0 : index
    %c0_27 = arith.constant 0 : index
    %c0_28 = arith.constant 0 : index
    %44 = vector.load %arg8[%c0_26, %c0_27, %c0_28] : memref<1x1x8xf32, #tpu.memory_space<vmem>>, vector<1x1x8xf32>
    %45 = vector.shape_cast %44 : vector<1x1x8xf32> to vector<1x8xf32>
    %46 = vector.shape_cast %43 : vector<1x8xf32> to vector<1x1x8xf32>
    tpu.vector_store %arg8[%c0_26, %c0_27, %c0_28], %46 {strides = array<i32>} : memref<1x1x8xf32, #tpu.memory_space<vmem>>, vector<1x1x8xf32>,
    %47 = arith.mulf %38, %38 : vector<8x8xf32>
    %cst_29 = arith.constant dense<0.000000e+00> : vector<8xf32>
    %48 = vector.multi_reduction <add>, %47, %cst_29 [0] : vector<8x8xf32> to vector<8xf32>
    %49 = vector.shape_cast %48 : vector<8xf32> to vector<1x8xf32>
    %c0_30 = arith.constant 0 : index
    %c0_31 = arith.constant 0 : index
    %c0_32 = arith.constant 0 : index
    %50 = vector.load %arg9[%c0_30, %c0_31, %c0_32] : memref<1x1x8xf32, #tpu.memory_space<vmem>>, vector<1x1x8xf32>
    %51 = vector.shape_cast %50 : vector<1x1x8xf32> to vector<1x8xf32>
    %52 = vector.shape_cast %49 : vector<1x8xf32> to vector<1x1x8xf32>
    tpu.vector_store %arg9[%c0_30, %c0_31, %c0_32], %52 {strides = array<i32>} : memref<1x1x8xf32, #tpu.memory_space<vmem>>, vector<1x1x8xf32>,
    return
  }
  func.func @transform_0(%arg0: i32) -> (i32, i32, i32) {
    %c0_i32 = arith.constant 0 : i32
    %c0_i32_0 = arith.constant 0 : i32
    %c0_i32_1 = arith.constant 0 : i32
    return %arg0, %c0_i32, %c0_i32_0 : i32, i32, i32
  }
  func.func @transform_1(%arg0: i32) -> (i32, i32) {
    %c0_i32 = arith.constant 0 : i32
    %c0_i32_0 = arith.constant 0 : i32
    %c0_i32_1 = arith.constant 0 : i32
    return %c0_i32, %c0_i32_0 : i32, i32
  }
  func.func @transform_2(%arg0: i32) -> (i32, i32) {
    %c0_i32 = arith.constant 0 : i32
    %c0_i32_0 = arith.constant 0 : i32
    %c0_i32_1 = arith.constant 0 : i32
    return %c0_i32, %c0_i32_0 : i32, i32
  }
  func.func @transform_3(%arg0: i32) -> (i32, i32) {
    %c0_i32 = arith.constant 0 : i32
    %c0_i32_0 = arith.constant 0 : i32
    %c0_i32_1 = arith.constant 0 : i32
    return %c0_i32, %c0_i32_0 : i32, i32
  }
  func.func @transform_4(%arg0: i32) -> (i32, i32) {
    %c0_i32 = arith.constant 0 : i32
    %c0_i32_0 = arith.constant 0 : i32
    %c0_i32_1 = arith.constant 0 : i32
    return %c0_i32, %c0_i32_0 : i32, i32
  }
  func.func @transform_5(%arg0: i32) -> (i32, i32) {
    %c0_i32 = arith.constant 0 : i32
    %c0_i32_0 = arith.constant 0 : i32
    %c0_i32_1 = arith.constant 0 : i32
    return %c0_i32, %c0_i32_0 : i32, i32
  }
  func.func @transform_6(%arg0: i32) -> (i32, i32, i32) {
    %c0_i32 = arith.constant 0 : i32
    %c0_i32_0 = arith.constant 0 : i32
    %c0_i32_1 = arith.constant 0 : i32
    return %arg0, %c0_i32, %c0_i32_0 : i32, i32, i32
  }
  func.func @transform_7(%arg0: i32) -> (i32, i32, i32) {
    %c0_i32 = arith.constant 0 : i32
    %c0_i32_0 = arith.constant 0 : i32
    %c0_i32_1 = arith.constant 0 : i32
    return %arg0, %c0_i32, %c0_i32_0 : i32, i32, i32
  }
  func.func @transform_8(%arg0: i32) -> (i32, i32, i32) {
    %c0_i32 = arith.constant 0 : i32
    %c0_i32_0 = arith.constant 0 : i32
    %c0_i32_1 = arith.constant 0 : i32
    return %arg0, %c0_i32, %c0_i32_0 : i32, i32, i32
  }
}

module attributes {stable_mosaic.version = 11 : i64} {
  func.func @_bn_relu_kernel(%arg0: i32, %arg1: memref<1x8x8xf32, #tpu.memory_space<vmem>>, %arg2: memref<1x8xf32, #tpu.memory_space<vmem>>, %arg3: memref<1x8xf32, #tpu.memory_space<vmem>>, %arg4: memref<1x8xf32, #tpu.memory_space<vmem>>, %arg5: memref<1x8xf32, #tpu.memory_space<vmem>>, %arg6: memref<1x8x8xf32, #tpu.memory_space<vmem>>) attributes {dimension_semantics = [#tpu.dimension_semantics<parallel>], iteration_bounds = array<i64: 2>, scalar_prefetch = 0 : i64, scratch_operands = 0 : i64, tpu.core_type = #tpu.core_type<tc>, window_params = [{transform_indices = @transform_0, window_bounds = array<i64: 1, 8, 8>}, {pipeline_mode = #tpu.pipeline_mode<synchronous>, transform_indices = @transform_1, window_bounds = array<i64: 1, 8>}, {pipeline_mode = #tpu.pipeline_mode<synchronous>, transform_indices = @transform_2, window_bounds = array<i64: 1, 8>}, {pipeline_mode = #tpu.pipeline_mode<synchronous>, transform_indices = @transform_3, window_bounds = array<i64: 1, 8>}, {pipeline_mode = #tpu.pipeline_mode<synchronous>, transform_indices = @transform_4, window_bounds = array<i64: 1, 8>}, {transform_indices = @transform_5, window_bounds = array<i64: 1, 8, 8>}]} {
    %c0 = arith.constant 0 : index
    %c0_0 = arith.constant 0 : index
    %0 = vector.load %arg2[%c0, %c0_0] : memref<1x8xf32, #tpu.memory_space<vmem>>, vector<1x8xf32>
    %cst = arith.constant 6.250000e-02 : f32
    %1 = vector.broadcast %cst : f32 to vector<1x8xf32>
    %2 = arith.mulf %0, %1 : vector<1x8xf32>
    %c0_1 = arith.constant 0 : index
    %c0_2 = arith.constant 0 : index
    %3 = vector.load %arg3[%c0_1, %c0_2] : memref<1x8xf32, #tpu.memory_space<vmem>>, vector<1x8xf32>
    %cst_3 = arith.constant 6.250000e-02 : f32
    %4 = vector.broadcast %cst_3 : f32 to vector<1x8xf32>
    %5 = arith.mulf %3, %4 : vector<1x8xf32>
    %6 = arith.mulf %2, %2 : vector<1x8xf32>
    %7 = arith.subf %5, %6 : vector<1x8xf32>
    %cst_4 = arith.constant 0.000000e+00 : f32
    %8 = vector.broadcast %cst_4 : f32 to vector<1x8xf32>
    %9 = arith.maximumf %7, %8 : vector<1x8xf32>
    %c0_5 = arith.constant 0 : index
    %c0_6 = arith.constant 0 : index
    %10 = vector.load %arg4[%c0_5, %c0_6] : memref<1x8xf32, #tpu.memory_space<vmem>>, vector<1x8xf32>
    %cst_7 = arith.constant 9.99999974E-6 : f32
    %11 = vector.broadcast %cst_7 : f32 to vector<1x8xf32>
    %12 = arith.addf %9, %11 : vector<1x8xf32>
    %13 = math.rsqrt %12 : vector<1x8xf32>
    %14 = arith.mulf %10, %13 : vector<1x8xf32>
    %c0_8 = arith.constant 0 : index
    %c0_9 = arith.constant 0 : index
    %15 = vector.load %arg5[%c0_8, %c0_9] : memref<1x8xf32, #tpu.memory_space<vmem>>, vector<1x8xf32>
    %16 = arith.mulf %2, %14 : vector<1x8xf32>
    %17 = arith.subf %15, %16 : vector<1x8xf32>
    %c0_10 = arith.constant 0 : index
    %c0_11 = arith.constant 0 : index
    %c0_12 = arith.constant 0 : index
    %18 = vector.load %arg1[%c0_10, %c0_11, %c0_12] : memref<1x8x8xf32, #tpu.memory_space<vmem>>, vector<1x8x8xf32>
    %19 = vector.shape_cast %18 : vector<1x8x8xf32> to vector<8x8xf32>
    %20 = vector.broadcast %14 : vector<1x8xf32> to vector<8x8xf32>
    %21 = arith.mulf %19, %20 : vector<8x8xf32>
    %22 = vector.broadcast %17 : vector<1x8xf32> to vector<8x8xf32>
    %23 = arith.addf %21, %22 : vector<8x8xf32>
    %cst_13 = arith.constant 0.000000e+00 : f32
    %24 = vector.broadcast %cst_13 : f32 to vector<8x8xf32>
    %25 = arith.maximumf %23, %24 : vector<8x8xf32>
    %c0_14 = arith.constant 0 : index
    %c0_15 = arith.constant 0 : index
    %c0_16 = arith.constant 0 : index
    %26 = vector.load %arg6[%c0_14, %c0_15, %c0_16] : memref<1x8x8xf32, #tpu.memory_space<vmem>>, vector<1x8x8xf32>
    %27 = vector.shape_cast %26 : vector<1x8x8xf32> to vector<8x8xf32>
    %28 = vector.shape_cast %25 : vector<8x8xf32> to vector<1x8x8xf32>
    tpu.vector_store %arg6[%c0_14, %c0_15, %c0_16], %28 {strides = array<i32>} : memref<1x8x8xf32, #tpu.memory_space<vmem>>, vector<1x8x8xf32>,
    return
  }
  func.func @transform_0(%arg0: i32) -> (i32, i32, i32) {
    %c0_i32 = arith.constant 0 : i32
    %c0_i32_0 = arith.constant 0 : i32
    %c0_i32_1 = arith.constant 0 : i32
    return %arg0, %c0_i32, %c0_i32_0 : i32, i32, i32
  }
  func.func @transform_1(%arg0: i32) -> (i32, i32) {
    %c0_i32 = arith.constant 0 : i32
    %c0_i32_0 = arith.constant 0 : i32
    %c0_i32_1 = arith.constant 0 : i32
    return %c0_i32, %c0_i32_0 : i32, i32
  }
  func.func @transform_2(%arg0: i32) -> (i32, i32) {
    %c0_i32 = arith.constant 0 : i32
    %c0_i32_0 = arith.constant 0 : i32
    %c0_i32_1 = arith.constant 0 : i32
    return %c0_i32, %c0_i32_0 : i32, i32
  }
  func.func @transform_3(%arg0: i32) -> (i32, i32) {
    %c0_i32 = arith.constant 0 : i32
    %c0_i32_0 = arith.constant 0 : i32
    %c0_i32_1 = arith.constant 0 : i32
    return %c0_i32, %c0_i32_0 : i32, i32
  }
  func.func @transform_4(%arg0: i32) -> (i32, i32) {
    %c0_i32 = arith.constant 0 : i32
    %c0_i32_0 = arith.constant 0 : i32
    %c0_i32_1 = arith.constant 0 : i32
    return %c0_i32, %c0_i32_0 : i32, i32
  }
  func.func @transform_5(%arg0: i32) -> (i32, i32, i32) {
    %c0_i32 = arith.constant 0 : i32
    %c0_i32_0 = arith.constant 0 : i32
    %c0_i32_1 = arith.constant 0 : i32
    return %arg0, %c0_i32, %c0_i32_0 : i32, i32, i32
  }
}

</mosaic_0001>

<bundles_post_ra>
// kernel: down_forward.5
= control target key start
LH: loop header
LB: loop body
LE: loop exit
PB: predicated region body
PF: predicated region fallthrough
CT: control target
= control target key end

     0   :  { %s362_s18 = smov 0   ;;  %s391_s0 = inlined_call_operand.vmem [shape: f32[2,8,8], index: 0, kind: input, shape index: {}]   ;;  %s392_s1 = inlined_call_operand.vmem [shape: f32[1,8], index: 1, kind: input, shape index: {}]   ;;  %s393_s2 = inlined_call_operand.vmem [shape: f32[1,8], index: 2, kind: input, shape index: {}]   ;;  %s394_s3 = inlined_call_operand.vmem [shape: f32[1,8], index: 3, kind: input, shape index: {}]   ;;  %s395_s4 = inlined_call_operand.vmem [shape: f32[1,8], index: 4, kind: input, shape index: {}]   ;;  %s396_s5 = inlined_call_operand.vmem [shape: f32[2,8,8], index: 5, kind: output, shape index: {}]  }
   0x1 LB: > { %s305_s19 = sadd.s32 4294967295, %s330_s18   ;;  %p309_p0 = scmp.ge.s32.totalorder %s330_s18, 1  ;;  %s330_s18 = sphi %s362_s18, %s15_s18  }
   0x2   : > { %p186_p1 = scmp.lt.s32.totalorder %s330_s18, 3 }
   0x4   : > { %p187_p2 = pnand %p309_p0, %p186_p1 }
   0x5   : > { %p212_p3 = scmp.lt.s32.totalorder (!%p187_p2), %s305_s19, 1 }
   0x6   : > { %190 = sbr.rel (%p187_p2) target bundleno = 49 (0x31), region = 40 }
   0xb   : > { %v220_v0 = vld [vmem:[%s392_s1] sm:$0x1]  ;;  %v236_v8 = vlaneseq  ;;  %s398_s19 = smov (!%p212_p3, %s305_s19), 1  ;;  %vm250_vm0 = vcmask 64512  }
   0xc   : > { %v222_v1 = vld [vmem:[%s393_s2] sm:$0x1]  ;;  %v221_v2 = vmul.f32 0.0625, %v220_v0  ;;  %s310_s24 = sshll.u32 %s398_s19, 3 }
   0xd   : > { %v223_v3 = vmul.f32 0.0625, %v222_v1  ;;  %v237_v9 = vshrl.u32 %v236_v8, 7  ;;  %v227_v10 = vld [vmem:[%s394_s3] sm:$0x1]  ;;  %s215_s29 = scalar_lea.vmem %s391_s0, %s310_s24  ;;  %s219_s9 = scalar_lea.vmem %s396_s5, %s310_s24 }
   0xe   : > { %v224_v4 = vmul.f32 %v221_v2, %v221_v2  ;;  %v231_v14 = vld [vmem:[%s395_s4] sm:$0x1] }
   0xf   : > { %v238_v11 = vsub.s32 0, %v237_v9  ;;  %v234_v15 = vld [vmem:[%s215_s29] sm:$0xff] }
  0x10   : > { %v225_v5 = vsub.f32 %v223_v3, %v224_v4 }
  0x12   : > { %v226_v6 = vmax.f32 %v225_v5, 0.0 }
  0x14   : > { %v228_v7 = vadd.f32 1e-05, %v226_v6 }
  0x16   : > { %322 = vrsqrt.f32 %v228_v7 }
  0x23   : > { %v323_v12 = vpop.eup %322 }
  0x24   : > { %v230_v13 = vmul.f32 %v323_v12, %v227_v10 }
  0x26   : > { %v232_v16 = vmul.f32 %v230_v13, %v221_v2  ;;  %v239_v17 = vrot.slane %v230_v13, %v238_v11 }
  0x28   : > { %v233_v18 = vsub.f32 %v231_v14, %v232_v16  ;;  %v241_v19 = vmul.f32 %v239_v17, %v234_v15 }
  0x2a   : > { %v246_v20 = vrot.slane %v233_v18, %v238_v11 }
  0x2c   : > { %v248_v21 = vadd.f32 %v246_v20, %v241_v19 }
  0x2e   : > { %v249_v22 = vmax.f32 %v248_v21, 0.0 }
  0x30   : > { %251 = vst.msk [vmem:[%s219_s9] sm:$0xff] %vm250_vm0, %v249_v22 }
  0x31 PF: > { %s15_s18 = sadd.s32 1, %s330_s18  }
  0x32   : > { %p12_p4 = scmp.ge.s32.totalorder %s15_s18, 4  }
  0x34   :  { %14 = sbr.rel (!%p12_p4) target bundleno = 1 (0x1), region = 70 }

// kernel: down_forward.4
= control target key start
LH: loop header
LB: loop body
LE: loop exit
PB: predicated region body
PF: predicated region fallthrough
CT: control target
= control target key end

     0   :  { %s802_s27 = smov 0   ;;  %s864_s0 = inlined_call_operand.vmem [shape: f32[2,8,8], index: 0, kind: input, shape index: {}]   ;;  %s865_s1 = inlined_call_operand.vmem [shape: f32[1,8], index: 1, kind: input, shape index: {}]   ;;  %s866_s2 = inlined_call_operand.vmem [shape: f32[1,8], index: 2, kind: input, shape index: {}]   ;;  %s867_s3 = inlined_call_operand.vmem [shape: f32[1,8], index: 3, kind: input, shape index: {}]   ;;  %s868_s4 = inlined_call_operand.vmem [shape: f32[1,8], index: 4, kind: input, shape index: {}]   ;;  %s869_s5 = inlined_call_operand.vmem [shape: f32[24,8], index: 5, kind: input, shape index: {}]   ;;  %s870_s6 = inlined_call_operand.vmem [shape: f32[2,8,8], index: 6, kind: output, shape index: {0}]   ;;  %s871_s7 = inlined_call_operand.vmem [shape: f32[2,1,8], index: 7, kind: output, shape index: {1}]   ;;  %s872_s8 = inlined_call_operand.vmem [shape: f32[2,1,8], index: 8, kind: output, shape index: {2}]  }
   0x1 LB: > { %s702_s28 = sadd.s32 4294967295, %s753_s27   ;;  %p706_p0 = scmp.ge.s32.totalorder %s753_s27, 1  ;;  %s753_s27 = sphi %s802_s27, %s19_s27  }
   0x2   : > { %p266_p1 = scmp.lt.s32.totalorder %s753_s27, 3 }
   0x4   : > { %p267_p2 = pnand %p706_p0, %p266_p1 }
   0x5   : > { %p304_p3 = scmp.lt.s32.totalorder (!%p267_p2), %s702_s28, 1 }
   0x6   : > { %270 = sbr.rel (%p267_p2) target bundleno = 267 (0x10b), region = 44 }
   0xb   : > { %v358_v0 = vld [vmem:[%s869_s5] sm:$0xff]  ;;  %v357_v1 = vld [vmem:[%s869_s5 + $0x8] sm:$0xff]  ;;  %v755_v2 = vmov 0.0   ;;  %vm756_vm0 = vmmov 0   ;;  %v334_v11 = vlaneseq  ;;  %s874_s28 = smov (!%p304_p3, %s702_s28), 1  ;;  %vm359_vm1 = vcmask 64512  }
   0xc   : > { %720 = vmatprep.subr.mxu0 %v755_v2  ;;  %725 = vmatprep.subr.mxu1 %v755_v2  ;;  %v318_v3 = vld [vmem:[%s865_s1] sm:$0x1]  ;;  %s707_s15 = sshll.u32 %s874_s28, 3  ;;  %vm351_vm2 = vcmask 1040384   ;;  %v505_v28 = vld [vmem:[%s869_s5 + $0x10] sm:$0xff]  ;;  %vm355_vm3 = vcmask 1046528   ;;  %s314_s10 = scalar_lea.vmem %s871_s7, %s874_s28 }
   0xd   : > { %v320_v4 = vld [vmem:[%s866_s2] sm:$0x1]  ;;  %721 = vmatpush3.msra.mxu0 %v358_v0  ;;  %722 = vmatprep.mubr.msk.f32.mxu0 %vm756_vm0, %v755_v2  ;;  %v319_v5 = vmul.f32 0.0625, %v318_v3  ;;  %v335_v12 = vshrl.u32 %v334_v11, 7  ;;  %s307_s20 = scalar_lea.vmem %s864_s0, %s707_s15  ;;  %s311_s29 = scalar_lea.vmem %s870_s6, %s707_s15  ;;  %vm588_vm4 = vcmask 57344  }
   0xe   : > { %v321_v6 = vmul.f32 0.0625, %v320_v4  ;;  %726 = vmatpush3.msra.mxu1 %v357_v1  ;;  %727 = vmatprep.mubr.msk.f32.mxu1 %vm756_vm0, %v755_v2  ;;  %v325_v13 = vld [vmem:[%s867_s3] sm:$0x1]  ;;  %s317_s13 = scalar_lea.vmem %s872_s8, %s874_s28 }
   0xf   : > { %730 = vmatprep.subr.mxu0 %v755_v2  ;;  %v322_v7 = vmul.f32 %v319_v5, %v319_v5  ;;  %v336_v14 = vsub.s32 0, %v335_v12  ;;  %v329_v17 = vld [vmem:[%s868_s4] sm:$0x1] }
  0x10   : > { %v332_v18 = vld [vmem:[%s307_s20] sm:$0xff] }
  0x11   : > { %v323_v8 = vsub.f32 %v321_v6, %v322_v7 }
  0x13   : > { %v324_v9 = vmax.f32 %v323_v8, 0.0 }
  0x15   : > { %v326_v10 = vadd.f32 1e-05, %v324_v9 }
  0x17   : > { %745 = vrsqrt.f32 %v326_v10 }
  0x24   : > { %v746_v15 = vpop.eup %745 }
  0x25   : > { %v328_v16 = vmul.f32 %v746_v15, %v325_v13 }
  0x27   : > { %v330_v19 = vmul.f32 %v328_v16, %v319_v5  ;;  %v337_v20 = vrot.slane %v328_v16, %v336_v14 }
  0x29   : > { %v331_v21 = vsub.f32 %v329_v17, %v330_v19  ;;  %v339_v22 = vmul.f32 %v337_v20, %v332_v18 }
  0x2b   : > { %v344_v23 = vrot.slane %v331_v21, %v336_v14 }
  0x2d   : > { %v346_v24 = vadd.f32 %v344_v23, %v339_v22 }
  0x2f   : > { %v347_v25 = vmax.f32 %v346_v24, 0.0 }
  0x31   : > { %v349_v26 = vrot.slane %v347_v25, 7  ;;  %728 = vmatmul.mubr.msk.f32.vlgmr.msra.gmra.mxu1 %vm359_vm1, %v347_v25  ;;  %v353_v27 = vrot.slane %v347_v25, 1 }
  0x33   : > { %v352_v29 = vsel %vm351_vm2, 0.0, %v349_v26  ;;  %v356_v30 = vsel %vm355_vm3, %v353_v27, 0.0 }
  0x34   : > { %723 = vmatmul.mubr.msk.f32.vlgmr.msra.gmra.mxu0 %vm359_vm1, %v352_v29 }
  0x35   : > { %731 = vmatpush3.msra.mxu0 %v505_v28  ;;  %732 = vmatprep.mubr.msk.f32.mxu0 %vm756_vm0, %v755_v2 }
  0x38   : > { %733 = vmatmul.mubr.msk.f32.vlgmr.msra.gmra.mxu0 %vm359_vm1, %v356_v30 }
  0xf1   : > { %v501_v31 = vpop.f32.mrf.mxu1 }
  0xf3   : > { %v729_v32 = vpop.f32.mrf.mxu1 }
  0xf4   : > { %v429_v33 = vpop.f32.mrf.mxu0 }
  0xf5   : > { %v502_v35 = vadd.f32 %v501_v31, %v429_v33 }
  0xf6   : > { %v724_v34 = vpop.f32.mrf.mxu0 }
  0xf8   : > { %v575_v36 = vpop.f32.mrf.mxu0 }
  0xf9   : > { %v579_v37 = vadd.f32 %v575_v36, %v502_v35 }
  0xfa   : > { %v734_v38 = vpop.f32.mrf.mxu0 }
  0xfb   : > { %580 = vst.msk [vmem:[%s311_s29] sm:$0xff] %vm359_vm1, %v579_v37  ;;  %v581_v39 = vsel %vm359_vm1, %v579_v37, 0.0  ;;  %v590_v40 = vmul.f32 %v579_v37, %v579_v37 }
  0xfc   : > { %v582_v41 = vrot.slane %v581_v39, 4 }
  0xfd   : > { %v591_v42 = vsel %vm359_vm1, %v590_v40, 0.0 }
  0xfe   : > { %v583_v43 = vadd.f32 %v582_v41, %v581_v39  ;;  %v592_v44 = vrot.slane %v591_v42, 4 }
 0x100   : > { %v584_v45 = vrot.slane %v583_v43, 2  ;;  %v593_v46 = vadd.f32 %v592_v44, %v591_v42 }
 0x102   : > { %v585_v47 = vadd.f32 %v584_v45, %v583_v43  ;;  %v594_v48 = vrot.slane %v593_v46, 2 }
 0x104   : > { %v586_v49 = vrot.slane %v585_v47, 1  ;;  %v595_v50 = vadd.f32 %v594_v48, %v593_v46 }
 0x106   : > { %v587_v51 = vadd.f32 %v586_v49, %v585_v47  ;;  %v596_v52 = vrot.slane %v595_v50, 1 }
 0x108   : > { %589 = vst.msk [vmem:[%s314_s10] sm:$0x1] %vm588_vm4, %v587_v51  ;;  %v597_v53 = vadd.f32 %v596_v52, %v595_v50 }
 0x10a   : > { %598 = vst.msk [vmem:[%s317_s13] sm:$0x1] %vm588_vm4, %v597_v53 }
 0x10b PF: > { %s19_s27 = sadd.s32 1, %s753_s27  }
 0x10c   : > { %p16_p4 = scmp.ge.s32.totalorder %s19_s27, 4  }
 0x10e   :  { %18 = sbr.rel (!%p16_p4) target bundleno = 1 (0x1), region = 98 }

// kernel: down_forward.3
= control target key start
LH: loop header
LB: loop body
LE: loop exit
PB: predicated region body
PF: predicated region fallthrough
CT: control target
= control target key end

     0   :  { %s666_s15 = smov 0   ;;  %s710_s0 = inlined_call_operand.vmem [shape: f32[2,16,4], index: 0, kind: input, shape index: {}]   ;;  %s711_s1 = inlined_call_operand.vmem [shape: f32[12,8], index: 1, kind: input, shape index: {}]   ;;  %s712_s2 = inlined_call_operand.vmem [shape: f32[2,8,8], index: 2, kind: output, shape index: {0}]   ;;  %s713_s3 = inlined_call_operand.vmem [shape: f32[2,1,8], index: 3, kind: output, shape index: {1}]   ;;  %s714_s4 = inlined_call_operand.vmem [shape: f32[2,1,8], index: 4, kind: output, shape index: {2}]  }
   0x1 LB: > { %s582_s16 = sadd.s32 4294967295, %s637_s15   ;;  %p586_p0 = scmp.ge.s32.totalorder %s637_s15, 1  ;;  %s637_s15 = sphi %s666_s15, %s15_s15  }
   0x2   : > { %p167_p1 = scmp.lt.s32.totalorder %s637_s15, 3 }
   0x4   : > { %p168_p2 = pnand %p586_p0, %p167_p1 }
   0x5   : > { %p198_p3 = scmp.lt.s32.totalorder (!%p168_p2), %s582_s16, 1 }
   0x6   : > { %171 = sbr.rel (%p168_p2) target bundleno = 236 (0xec), region = 28 }
   0xb   : > { %v227_v0 = vld [vmem:[%s711_s1] sm:$0xf]  ;;  %vm232_vm0 = vcmask 1043456   ;;  %v639_v1 = vmov 0.0   ;;  %v226_v2 = vld [vmem:[%s711_s1 + $0x4] sm:$0xf] }
   0xc   : > { %606 = vmatprep.subr.mxu0 %v639_v1  ;;  %611 = vmatprep.subr.mxu1 %v639_v1  ;;  %vm640_vm1 = vmmov 0   ;;  %s716_s16 = smov (!%p198_p3, %s582_s16), 1  ;;  %vm228_vm2 = vcmask 31744   ;;  %vm220_vm3 = vcmask 1040384   ;;  %v381_v8 = vld [vmem:[%s711_s1 + $0x8] sm:$0xf] }
   0xd   : > { %607 = vmatpush3.msk.msra.mxu0 %vm232_vm0, %v227_v0  ;;  %608 = vmatprep.mubr.msk.f32.mxu0 %vm640_vm1, %v639_v1  ;;  %s599_s21 = sshll.u32 %s716_s16, 4  ;;  %vm224_vm4 = vcmask 1046528   ;;  %s589_s27 = sshll.u32 %s716_s16, 3  ;;  %vm459_vm5 = vcmask 64512   ;;  %vm468_vm6 = vcmask 57344  }
   0xe   : > { %612 = vmatpush3.msk.msra.mxu1 %vm232_vm0, %v226_v2  ;;  %613 = vmatprep.mubr.msk.f32.mxu1 %vm640_vm1, %v639_v1  ;;  %s202_s24 = scalar_lea.vmem %s710_s0, %s599_s21  ;;  %s206_s30 = scalar_lea.vmem %s712_s2, %s589_s27 }
   0xf   : > { %616 = vmatprep.subr.mxu0 %v639_v1  ;;  %v213_v3 = vld [vmem:[%s202_s24] ss:$2 sm:$0xff]  ;;  %v590_v4 = vld [vmem:[%s202_s24 + $0x1] ss:$2 sm:$0xff]  ;;  %s209_s7 = scalar_lea.vmem %s713_s3, %s716_s16  ;;  %s212_s10 = scalar_lea.vmem %s714_s4, %s716_s16 }
  0x10   : > { %v216_v5 = vmax.f32 %v213_v3, %v590_v4 }
  0x12   : > { %v218_v6 = vrot.slane %v216_v5, 7  ;;  %614 = vmatmul.mubr.msk.f32.vlgmr.msra.gmra.mxu1 %vm228_vm2, %v216_v5  ;;  %v222_v7 = vrot.slane %v216_v5, 1 }
  0x14   : > { %v221_v9 = vsel %vm220_vm3, 0.0, %v218_v6  ;;  %v225_v10 = vsel %vm224_vm4, %v222_v7, 0.0 }
  0x15   : > { %609 = vmatmul.mubr.msk.f32.vlgmr.msra.gmra.mxu0 %vm228_vm2, %v221_v9 }
  0x16   : > { %617 = vmatpush3.msk.msra.mxu0 %vm232_vm0, %v381_v8  ;;  %618 = vmatprep.mubr.msk.f32.mxu0 %vm640_vm1, %v639_v1 }
  0x19   : > { %619 = vmatmul.mubr.msk.f32.vlgmr.msra.gmra.mxu0 %vm228_vm2, %v225_v10 }
  0xd2   : > { %v377_v11 = vpop.f32.mrf.mxu1 }
  0xd4   : > { %v615_v12 = vpop.f32.mrf.mxu1 }
  0xd5   : > { %v302_v13 = vpop.f32.mrf.mxu0 }
  0xd6   : > { %v378_v15 = vadd.f32 %v377_v11, %v302_v13 }
  0xd7   : > { %v610_v14 = vpop.f32.mrf.mxu0 }
  0xd9   : > { %v454_v16 = vpop.f32.mrf.mxu0 }
  0xda   : > { %v458_v17 = vadd.f32 %v454_v16, %v378_v15 }
  0xdb   : > { %v620_v18 = vpop.f32.mrf.mxu0 }
  0xdc   : > { %460 = vst.msk [vmem:[%s206_s30] sm:$0xff] %vm459_vm5, %v458_v17  ;;  %v461_v19 = vsel %vm459_vm5, %v458_v17, 0.0  ;;  %v470_v20 = vmul.f32 %v458_v17, %v458_v17 }
  0xdd   : > { %v462_v21 = vrot.slane %v461_v19, 4 }
  0xde   : > { %v471_v22 = vsel %vm459_vm5, %v470_v20, 0.0 }
  0xdf   : > { %v463_v23 = vadd.f32 %v462_v21, %v461_v19  ;;  %v472_v24 = vrot.slane %v471_v22, 4 }
  0xe1   : > { %v464_v25 = vrot.slane %v463_v23, 2  ;;  %v473_v26 = vadd.f32 %v472_v24, %v471_v22 }
  0xe3   : > { %v465_v27 = vadd.f32 %v464_v25, %v463_v23  ;;  %v474_v28 = vrot.slane %v473_v26, 2 }
  0xe5   : > { %v466_v29 = vrot.slane %v465_v27, 1  ;;  %v475_v30 = vadd.f32 %v474_v28, %v473_v26 }
  0xe7   : > { %v467_v31 = vadd.f32 %v466_v29, %v465_v27  ;;  %v476_v32 = vrot.slane %v475_v30, 1 }
  0xe9   : > { %469 = vst.msk [vmem:[%s209_s7] sm:$0x1] %vm468_vm6, %v467_v31  ;;  %v477_v33 = vadd.f32 %v476_v32, %v475_v30 }
  0xeb   : > { %478 = vst.msk [vmem:[%s212_s10] sm:$0x1] %vm468_vm6, %v477_v33 }
  0xec PF: > { %s15_s15 = sadd.s32 1, %s637_s15  }
  0xed   : > { %p12_p4 = scmp.ge.s32.totalorder %s15_s15, 4  }
  0xef   :  { %14 = sbr.rel (!%p12_p4) target bundleno = 1 (0x1), region = 83 }

</bundles_post_ra>
